<compile_context>
chip_gen: v5e
topology: v5e:2x2
jax: 0.10.0
libtpu: 0.0.40
codegen_flags: <defaults>
</compile_context>

<pallas_src>
import functools

import jax
import jax.numpy as jnp
from jax import lax
from jax.experimental import pallas as pl
from jax.experimental.pallas import tpu as pltpu

_LANES = 128


def _round_up(v, m):
    return pl.cdiv(max(int(v), 1), m) * m


@functools.lru_cache(maxsize=None)
def _vmem_limit_bytes() -> int:
    """Per-generation scoped-VMEM limit (leave headroom for Mosaic scratch)."""
    cap = 64 << 20
    try:
        info = pltpu.get_tpu_info()
        cap = int(getattr(info, "vmem_capacity_bytes", cap))
    except Exception:
        pass
    # ~100 MiB on 128-MiB parts (v5e/v6e), ~52 MiB on 64-MiB parts (v7x).
    return int(max(32 << 20, min(cap - (12 << 20), 100 << 20)))


# ----------------------------------------------------------------------------
# Kernel
# ----------------------------------------------------------------------------
def _dagnn_kernel(x_ref, a_ref, w1_ref, w2_ref, s_ref, o_ref, *, K, unroll_hops):
    # Gridless invocation: the whole (small) problem lives in VMEM.
    # All inputs already bf16; matmuls feed the MXU with f32 accumulation.

    # --- MLP: Linear(no bias) -> ReLU -> Linear(no bias) -> ReLU ------------
    h = jnp.dot(x_ref[...], w1_ref[...], preferred_element_type=jnp.float32)
    h = jnp.maximum(h, 0.0)                                      # [N, Hp] f32
    feats = jnp.dot(h.astype(jnp.bfloat16), w2_ref[...],
                    preferred_element_type=jnp.float32)
    feats = jnp.maximum(feats, 0.0)                              # [N, Fp] f32

    a_bf = a_ref[...]                                            # [N, N]  bf16
    s_col = s_ref[...]                                           # [Fp, 1] bf16

    def gated(f32, fb):
        # Gate logits on the MXU ([N,Fp]x[Fp,1] -> [N,1] f32); sigmoid on the
        # EUP; per-node scale stays f32 on the VPU (v5e has no bf16 VALU).
        logits = jnp.dot(fb, s_col, preferred_element_type=jnp.float32)
        return jax.nn.sigmoid(logits) * f32

    feats_bf = feats.astype(jnp.bfloat16)          # reused for A@H *and* gate
    acc = gated(feats, feats_bf)

    def hop(carry):
        fb, acc = carry
        f32 = jnp.dot(a_bf, fb, preferred_element_type=jnp.float32)
        fb_new = f32.astype(jnp.bfloat16)
        return fb_new, acc + gated(f32, fb_new)

    if unroll_hops:
        carry = (feats_bf, acc)
        for _ in range(K):
            carry = hop(carry)
        _, acc = carry
    else:
        # Large feats: bound live ranges (one hop resident at a time).
        _, acc = lax.fori_loop(0, K, lambda _, c: hop(c), (feats_bf, acc))

    o_ref[...] = acc.astype(o_ref.dtype)


# ----------------------------------------------------------------------------
# Host-side wrapper
# ----------------------------------------------------------------------------
def prepare_dagnn_params(w1, w2, s_row):
    """Pad to lane-dense widths and cast to bf16 ONCE (model-load time).

    Zero-padded W1 columns / W2 rows+columns / s entries keep the math exact:
    relu(0)=0, zero W2 rows contribute nothing, zero output columns do not
    change the gate dot, the A@H hops or the accumulated sum.
    """
    F_in, Hd = w1.shape
    _, F_out = w2.shape
    Hp = _round_up(Hd, _LANES)
    Fp = _round_up(F_out, _LANES)
    w1p = jnp.zeros((F_in, Hp), jnp.bfloat16).at[:, :Hd].set(
        w1.astype(jnp.bfloat16))
    w2p = jnp.zeros((Hp, Fp), jnp.bfloat16).at[:Hd, :F_out].set(
        w2.astype(jnp.bfloat16))
    s_col = jnp.zeros((Fp, 1), jnp.bfloat16).at[:F_out, 0].set(
        jnp.asarray(s_row).reshape(-1).astype(jnp.bfloat16))
    return {"w1": w1p, "w2": w2p, "s": s_col, "f_out": int(F_out)}


@functools.partial(jax.jit, static_argnames=("K", "f_out"))
def _dagnn_forward_padded(x, a_norm, w1p, w2p, s_col, *, K, f_out):
    N, F_in = x.shape
    Hp = w1p.shape[1]
    Fp = w2p.shape[1]

    x_bf = x.astype(jnp.bfloat16)
    a_bf = a_norm.astype(jnp.bfloat16)

    vmem_limit = _vmem_limit_bytes()
    # Rough all-resident footprint: bf16 inputs + f32/bf16 intermediates.
    resident = (2 * N * N                         # A (bf16)  -- dominant
                + 2 * N * F_in                    # x (bf16)
                + 2 * (F_in * Hp + Hp * Fp + Fp)  # weights + gate vec (bf16)
                + 4 * N * Hp                      # h (f32)
                + (4 + 2 + 4 + 4) * N * Fp)       # feats f32/bf16, acc, out
    if resident > int(0.8 * vmem_limit):
        # TODO(synk): HBM-streaming path for large graphs (see header).
        raise NotImplementedError(
            f"DAGNN all-resident VMEM kernel: need ~{resident} B but scoped "
            f"VMEM limit is {vmem_limit} B; large-graph streaming path not "
            "implemented.")

    flops = int(2 * (N * F_in * Hp + N * Hp * Fp + K * N * N * Fp
                     + (K + 1) * N * Fp)          # gate-logit matmuls
                + (K + 1) * 3 * N * Fp)           # gate scale + accumulate
    bytes_accessed = int(2 * (N * F_in + N * N + F_in * Hp + Hp * Fp + Fp)
                         + 4 * N * Fp)

    kernel = functools.partial(_dagnn_kernel, K=K,
                               unroll_hops=(N * Fp <= (256 * 1024)))
    vmem_spec = pl.BlockSpec(memory_space=pltpu.MemorySpace.VMEM)
    out_padded = pl.pallas_call(
        kernel,
        out_shape=jax.ShapeDtypeStruct((N, Fp), jnp.float32),
        in_specs=[vmem_spec] * 5,
        out_specs=vmem_spec,
        compiler_params=pltpu.CompilerParams(vmem_limit_bytes=vmem_limit),
        cost_estimate=pl.CostEstimate(
            flops=flops,
            transcendentals=(K + 1) * N,
            bytes_accessed=bytes_accessed),
    )(x_bf, a_bf, w1p, w2p, s_col)
    return out_padded[:, :f_out]


def dagnn_forward(x, a_norm, params, *, K=10):
    return _dagnn_forward_padded(x, a_norm, params["w1"], params["w2"],
                                 params["s"], K=K, f_out=params["f_out"])


# ----------------------------------------------------------------------------
# References
# ----------------------------------------------------------------------------
def _reference_f32(x, a_norm, w1, w2, s_row, K=10):
    h = jnp.maximum(x @ w1, 0.0)
    f = jnp.maximum(h @ w2, 0.0)
    hops = [f]
    for _ in range(K):
        f = a_norm @ f
        hops.append(f)
    H = jnp.stack(hops, axis=1)                                   # [N, K+1, F]
    S = jax.nn.sigmoid(jnp.einsum("nkf,f->nk", H, jnp.asarray(s_row).reshape(-1)))
    return jnp.einsum("nk,nkf->nf", S, H)


def _reference_bf16_matched(x, a_norm, params, K=10):
    # Exactly the kernel's math: bf16 MXU inputs (incl. gate logits), f32 acc.
    bf = jnp.bfloat16
    w1p, w2p, s_col = params["w1"], params["w2"], params["s"]
    f_out = params["f_out"]
    x_bf = x.astype(bf)
    a_bf = a_norm.astype(bf)
    h = jnp.maximum(jnp.dot(x_bf, w1p, preferred_element_type=jnp.float32), 0.0)
    f = jnp.maximum(jnp.dot(h.astype(bf), w2p,
                            preferred_element_type=jnp.float32), 0.0)

    def gated(f32, fb):
        logits = jnp.dot(fb, s_col, preferred_element_type=jnp.float32)
        return jax.nn.sigmoid(logits) * f32

    fb = f.astype(bf)
    acc = gated(f, fb)
    for _ in range(K):
        f = jnp.dot(a_bf, fb, preferred_element_type=jnp.float32)
        fb = f.astype(bf)
        acc = acc + gated(f, fb)
    return acc[:, :f_out]


# ----------------------------------------------------------------------------
if __name__ == "__main__":
    # Small deterministic problem.
    N = 16          # nodes
    F_in = 32       # in_features
    HID = 64        # hids=[64]
    F_out = 8       # out_features
    K = 10

    key = jax.random.PRNGKey(0)
    kx, kw1, kw2, ks, ke = jax.random.split(key, 5)

    x = jax.random.normal(kx, (N, F_in), dtype=jnp.float32)

    # Parameters (deterministic init, bias=False everywhere as in the module).
    w1 = jax.random.normal(kw1, (F_in, HID), dtype=jnp.float32) * (1.0 / F_in ** 0.5)
    w2 = jax.random.normal(kw2, (HID, F_out), dtype=jnp.float32) * (1.0 / HID ** 0.5)
    s_row = jax.random.normal(ks, (1, F_out), dtype=jnp.float32) * (1.0 / F_out ** 0.5)

    # Synthetic undirected graph: ring (degree > 0 everywhere) + random edges.
    adj = jnp.zeros((N, N), dtype=jnp.float32)
    idx = jnp.arange(N)
    adj = adj.at[idx, (idx + 1) % N].set(1.0)
    adj = adj.at[(idx + 1) % N, idx].set(1.0)
    extra = (jax.random.uniform(ke, (N, N)) > 0.8).astype(jnp.float32)
    extra = jnp.maximum(extra, extra.T) * (1.0 - jnp.eye(N, dtype=jnp.float32))
    adj = jnp.minimum(adj + extra, 1.0)
    deg = jnp.sum(adj, axis=1)
    dinv = deg ** -0.5
    a_norm = adj * dinv[:, None] * dinv[None, :]      # D^-1/2 A D^-1/2

    # Pad/cast weights once (model-load time), then run the kernel.
    params = prepare_dagnn_params(w1, w2, s_row)
    out = dagnn_forward(x, a_norm, params, K=K)
    out = jax.block_until_ready(out)
    assert out.shape == (N, F_out)

    # Tight check against a reference that uses exactly the kernel's bf16 math.
    ref_m = _reference_bf16_matched(x, a_norm, params, K=K)
    assert jnp.allclose(out, ref_m, atol=2e-3, rtol=2e-3), \
        "mismatch vs bf16-matched reference"

    # Loose check against the pure-f32 module semantics (bf16 drift over K hops).
    ref = _reference_f32(x, a_norm, w1, w2, s_row, K=K)
    assert jnp.allclose(out, ref, atol=8e-2, rtol=8e-2), \
        "mismatch vs f32 reference"

    print("KERNEL_OK")
</pallas_src>

<mosaic_0001>
module attributes {stable_mosaic.version = 11 : i64} {
  func.func @_dagnn_kernel(%arg0: memref<16x32xbf16, #tpu.memory_space<vmem>>, %arg1: memref<16x16xbf16, #tpu.memory_space<vmem>>, %arg2: memref<32x128xbf16, #tpu.memory_space<vmem>>, %arg3: memref<128x128xbf16, #tpu.memory_space<vmem>>, %arg4: memref<128x1xbf16, #tpu.memory_space<vmem>>, %arg5: memref<16x128xf32, #tpu.memory_space<vmem>>) attributes {dimension_semantics = [], scalar_prefetch = 0 : i64, scratch_operands = 0 : i64, tpu.core_type = #tpu.core_type<tc>} {
    %c0 = arith.constant 0 : index
    %c0_0 = arith.constant 0 : index
    %0 = vector.load %arg0[%c0, %c0_0] : memref<16x32xbf16, #tpu.memory_space<vmem>>, vector<16x32xbf16>
    %c0_1 = arith.constant 0 : index
    %c0_2 = arith.constant 0 : index
    %1 = vector.load %arg2[%c0_1, %c0_2] : memref<32x128xbf16, #tpu.memory_space<vmem>>, vector<32x128xbf16>
    %cst = arith.constant dense<0.000000e+00> : vector<16x128xf32>
    %2 = tpu.matmul %0, %1, %cst {dimension_numbers = #tpu.dot_dimension_numbers<[1], [0], [0], [1], [0, 0, 1, 1], [], []>} : vector<16x32xbf16>, vector<32x128xbf16>, vector<16x128xf32> -> vector<16x128xf32>
    %cst_3 = arith.constant 0.000000e+00 : f32
    %3 = vector.broadcast %cst_3 : f32 to vector<16x128xf32>
    %4 = arith.maximumf %2, %3 : vector<16x128xf32>
    %5 = arith.truncf %4 : vector<16x128xf32> to vector<16x128xbf16>
    %c0_4 = arith.constant 0 : index
    %c0_5 = arith.constant 0 : index
    %6 = vector.load %arg3[%c0_4, %c0_5] : memref<128x128xbf16, #tpu.memory_space<vmem>>, vector<128x128xbf16>
    %cst_6 = arith.constant dense<0.000000e+00> : vector<16x128xf32>
    %7 = tpu.matmul %5, %6, %cst_6 {dimension_numbers = #tpu.dot_dimension_numbers<[1], [0], [0], [1], [0, 0, 1, 1], [], []>} : vector<16x128xbf16>, vector<128x128xbf16>, vector<16x128xf32> -> vector<16x128xf32>
    %cst_7 = arith.constant 0.000000e+00 : f32
    %8 = vector.broadcast %cst_7 : f32 to vector<16x128xf32>
    %9 = arith.maximumf %7, %8 : vector<16x128xf32>
    %c0_8 = arith.constant 0 : index
    %c0_9 = arith.constant 0 : index
    %10 = vector.load %arg1[%c0_8, %c0_9] : memref<16x16xbf16, #tpu.memory_space<vmem>>, vector<16x16xbf16>
    %c0_10 = arith.constant 0 : index
    %c0_11 = arith.constant 0 : index
    %11 = vector.load %arg4[%c0_10, %c0_11] : memref<128x1xbf16, #tpu.memory_space<vmem>>, vector<128x1xbf16>
    %12 = arith.truncf %9 : vector<16x128xf32> to vector<16x128xbf16>
    %cst_12 = arith.constant dense<0.000000e+00> : vector<16x1xf32>
    %13 = tpu.matmul %12, %11, %cst_12 {dimension_numbers = #tpu.dot_dimension_numbers<[1], [0], [0], [1], [0, 0, 1, 1], [], []>} : vector<16x128xbf16>, vector<128x1xbf16>, vector<16x1xf32> -> vector<16x1xf32>
    %14 = arith.negf %13 : vector<16x1xf32>
    %15 = math.exp %14 : vector<16x1xf32>
    %cst_13 = arith.constant 1.000000e+00 : f32
    %16 = vector.broadcast %cst_13 : f32 to vector<16x1xf32>
    %17 = arith.addf %16, %15 : vector<16x1xf32>
    %18 = arith.divf %16, %17 : vector<16x1xf32>
    %19 = vector.broadcast %18 : vector<16x1xf32> to vector<16x128xf32>
    %20 = arith.mulf %19, %9 : vector<16x128xf32>
    %cst_14 = arith.constant dense<0.000000e+00> : vector<16x128xf32>
    %21 = tpu.matmul %10, %12, %cst_14 {dimension_numbers = #tpu.dot_dimension_numbers<[1], [0], [0], [1], [0, 0, 1, 1], [], []>} : vector<16x16xbf16>, vector<16x128xbf16>, vector<16x128xf32> -> vector<16x128xf32>
    %22 = arith.truncf %21 : vector<16x128xf32> to vector<16x128xbf16>
    %cst_15 = arith.constant dense<0.000000e+00> : vector<16x1xf32>
    %23 = tpu.matmul %22, %11, %cst_15 {dimension_numbers = #tpu.dot_dimension_numbers<[1], [0], [0], [1], [0, 0, 1, 1], [], []>} : vector<16x128xbf16>, vector<128x1xbf16>, vector<16x1xf32> -> vector<16x1xf32>
    %24 = arith.negf %23 : vector<16x1xf32>
    %25 = math.exp %24 : vector<16x1xf32>
    %cst_16 = arith.constant 1.000000e+00 : f32
    %26 = vector.broadcast %cst_16 : f32 to vector<16x1xf32>
    %27 = arith.addf %26, %25 : vector<16x1xf32>
    %28 = arith.divf %26, %27 : vector<16x1xf32>
    %29 = vector.broadcast %28 : vector<16x1xf32> to vector<16x128xf32>
    %30 = arith.mulf %29, %21 : vector<16x128xf32>
    %31 = arith.addf %20, %30 : vector<16x128xf32>
    %cst_17 = arith.constant dense<0.000000e+00> : vector<16x128xf32>
    %32 = tpu.matmul %10, %22, %cst_17 {dimension_numbers = #tpu.dot_dimension_numbers<[1], [0], [0], [1], [0, 0, 1, 1], [], []>} : vector<16x16xbf16>, vector<16x128xbf16>, vector<16x128xf32> -> vector<16x128xf32>
    %33 = arith.truncf %32 : vector<16x128xf32> to vector<16x128xbf16>
    %cst_18 = arith.constant dense<0.000000e+00> : vector<16x1xf32>
    %34 = tpu.matmul %33, %11, %cst_18 {dimension_numbers = #tpu.dot_dimension_numbers<[1], [0], [0], [1], [0, 0, 1, 1], [], []>} : vector<16x128xbf16>, vector<128x1xbf16>, vector<16x1xf32> -> vector<16x1xf32>
    %35 = arith.negf %34 : vector<16x1xf32>
    %36 = math.exp %35 : vector<16x1xf32>
    %cst_19 = arith.constant 1.000000e+00 : f32
    %37 = vector.broadcast %cst_19 : f32 to vector<16x1xf32>
    %38 = arith.addf %37, %36 : vector<16x1xf32>
    %39 = arith.divf %37, %38 : vector<16x1xf32>
    %40 = vector.broadcast %39 : vector<16x1xf32> to vector<16x128xf32>
    %41 = arith.mulf %40, %32 : vector<16x128xf32>
    %42 = arith.addf %31, %41 : vector<16x128xf32>
    %cst_20 = arith.constant dense<0.000000e+00> : vector<16x128xf32>
    %43 = tpu.matmul %10, %33, %cst_20 {dimension_numbers = #tpu.dot_dimension_numbers<[1], [0], [0], [1], [0, 0, 1, 1], [], []>} : vector<16x16xbf16>, vector<16x128xbf16>, vector<16x128xf32> -> vector<16x128xf32>
    %44 = arith.truncf %43 : vector<16x128xf32> to vector<16x128xbf16>
    %cst_21 = arith.constant dense<0.000000e+00> : vector<16x1xf32>
    %45 = tpu.matmul %44, %11, %cst_21 {dimension_numbers = #tpu.dot_dimension_numbers<[1], [0], [0], [1], [0, 0, 1, 1], [], []>} : vector<16x128xbf16>, vector<128x1xbf16>, vector<16x1xf32> -> vector<16x1xf32>
    %46 = arith.negf %45 : vector<16x1xf32>
    %47 = math.exp %46 : vector<16x1xf32>
    %cst_22 = arith.constant 1.000000e+00 : f32
    %48 = vector.broadcast %cst_22 : f32 to vector<16x1xf32>
    %49 = arith.addf %48, %47 : vector<16x1xf32>
    %50 = arith.divf %48, %49 : vector<16x1xf32>
    %51 = vector.broadcast %50 : vector<16x1xf32> to vector<16x128xf32>
    %52 = arith.mulf %51, %43 : vector<16x128xf32>
    %53 = arith.addf %42, %52 : vector<16x128xf32>
    %cst_23 = arith.constant dense<0.000000e+00> : vector<16x128xf32>
    %54 = tpu.matmul %10, %44, %cst_23 {dimension_numbers = #tpu.dot_dimension_numbers<[1], [0], [0], [1], [0, 0, 1, 1], [], []>} : vector<16x16xbf16>, vector<16x128xbf16>, vector<16x128xf32> -> vector<16x128xf32>
    %55 = arith.truncf %54 : vector<16x128xf32> to vector<16x128xbf16>
    %cst_24 = arith.constant dense<0.000000e+00> : vector<16x1xf32>
    %56 = tpu.matmul %55, %11, %cst_24 {dimension_numbers = #tpu.dot_dimension_numbers<[1], [0], [0], [1], [0, 0, 1, 1], [], []>} : vector<16x128xbf16>, vector<128x1xbf16>, vector<16x1xf32> -> vector<16x1xf32>
    %57 = arith.negf %56 : vector<16x1xf32>
    %58 = math.exp %57 : vector<16x1xf32>
    %cst_25 = arith.constant 1.000000e+00 : f32
    %59 = vector.broadcast %cst_25 : f32 to vector<16x1xf32>
    %60 = arith.addf %59, %58 : vector<16x1xf32>
    %61 = arith.divf %59, %60 : vector<16x1xf32>
    %62 = vector.broadcast %61 : vector<16x1xf32> to vector<16x128xf32>
    %63 = arith.mulf %62, %54 : vector<16x128xf32>
    %64 = arith.addf %53, %63 : vector<16x128xf32>
    %cst_26 = arith.constant dense<0.000000e+00> : vector<16x128xf32>
    %65 = tpu.matmul %10, %55, %cst_26 {dimension_numbers = #tpu.dot_dimension_numbers<[1], [0], [0], [1], [0, 0, 1, 1], [], []>} : vector<16x16xbf16>, vector<16x128xbf16>, vector<16x128xf32> -> vector<16x128xf32>
    %66 = arith.truncf %65 : vector<16x128xf32> to vector<16x128xbf16>
    %cst_27 = arith.constant dense<0.000000e+00> : vector<16x1xf32>
    %67 = tpu.matmul %66, %11, %cst_27 {dimension_numbers = #tpu.dot_dimension_numbers<[1], [0], [0], [1], [0, 0, 1, 1], [], []>} : vector<16x128xbf16>, vector<128x1xbf16>, vector<16x1xf32> -> vector<16x1xf32>
    %68 = arith.negf %67 : vector<16x1xf32>
    %69 = math.exp %68 : vector<16x1xf32>
    %cst_28 = arith.constant 1.000000e+00 : f32
    %70 = vector.broadcast %cst_28 : f32 to vector<16x1xf32>
    %71 = arith.addf %70, %69 : vector<16x1xf32>
    %72 = arith.divf %70, %71 : vector<16x1xf32>
    %73 = vector.broadcast %72 : vector<16x1xf32> to vector<16x128xf32>
    %74 = arith.mulf %73, %65 : vector<16x128xf32>
    %75 = arith.addf %64, %74 : vector<16x128xf32>
    %cst_29 = arith.constant dense<0.000000e+00> : vector<16x128xf32>
    %76 = tpu.matmul %10, %66, %cst_29 {dimension_numbers = #tpu.dot_dimension_numbers<[1], [0], [0], [1], [0, 0, 1, 1], [], []>} : vector<16x16xbf16>, vector<16x128xbf16>, vector<16x128xf32> -> vector<16x128xf32>
    %77 = arith.truncf %76 : vector<16x128xf32> to vector<16x128xbf16>
    %cst_30 = arith.constant dense<0.000000e+00> : vector<16x1xf32>
    %78 = tpu.matmul %77, %11, %cst_30 {dimension_numbers = #tpu.dot_dimension_numbers<[1], [0], [0], [1], [0, 0, 1, 1], [], []>} : vector<16x128xbf16>, vector<128x1xbf16>, vector<16x1xf32> -> vector<16x1xf32>
    %79 = arith.negf %78 : vector<16x1xf32>
    %80 = math.exp %79 : vector<16x1xf32>
    %cst_31 = arith.constant 1.000000e+00 : f32
    %81 = vector.broadcast %cst_31 : f32 to vector<16x1xf32>
    %82 = arith.addf %81, %80 : vector<16x1xf32>
    %83 = arith.divf %81, %82 : vector<16x1xf32>
    %84 = vector.broadcast %83 : vector<16x1xf32> to vector<16x128xf32>
    %85 = arith.mulf %84, %76 : vector<16x128xf32>
    %86 = arith.addf %75, %85 : vector<16x128xf32>
    %cst_32 = arith.constant dense<0.000000e+00> : vector<16x128xf32>
    %87 = tpu.matmul %10, %77, %cst_32 {dimension_numbers = #tpu.dot_dimension_numbers<[1], [0], [0], [1], [0, 0, 1, 1], [], []>} : vector<16x16xbf16>, vector<16x128xbf16>, vector<16x128xf32> -> vector<16x128xf32>
    %88 = arith.truncf %87 : vector<16x128xf32> to vector<16x128xbf16>
    %cst_33 = arith.constant dense<0.000000e+00> : vector<16x1xf32>
    %89 = tpu.matmul %88, %11, %cst_33 {dimension_numbers = #tpu.dot_dimension_numbers<[1], [0], [0], [1], [0, 0, 1, 1], [], []>} : vector<16x128xbf16>, vector<128x1xbf16>, vector<16x1xf32> -> vector<16x1xf32>
    %90 = arith.negf %89 : vector<16x1xf32>
    %91 = math.exp %90 : vector<16x1xf32>
    %cst_34 = arith.constant 1.000000e+00 : f32
    %92 = vector.broadcast %cst_34 : f32 to vector<16x1xf32>
    %93 = arith.addf %92, %91 : vector<16x1xf32>
    %94 = arith.divf %92, %93 : vector<16x1xf32>
    %95 = vector.broadcast %94 : vector<16x1xf32> to vector<16x128xf32>
    %96 = arith.mulf %95, %87 : vector<16x128xf32>
    %97 = arith.addf %86, %96 : vector<16x128xf32>
    %cst_35 = arith.constant dense<0.000000e+00> : vector<16x128xf32>
    %98 = tpu.matmul %10, %88, %cst_35 {dimension_numbers = #tpu.dot_dimension_numbers<[1], [0], [0], [1], [0, 0, 1, 1], [], []>} : vector<16x16xbf16>, vector<16x128xbf16>, vector<16x128xf32> -> vector<16x128xf32>
    %99 = arith.truncf %98 : vector<16x128xf32> to vector<16x128xbf16>
    %cst_36 = arith.constant dense<0.000000e+00> : vector<16x1xf32>
    %100 = tpu.matmul %99, %11, %cst_36 {dimension_numbers = #tpu.dot_dimension_numbers<[1], [0], [0], [1], [0, 0, 1, 1], [], []>} : vector<16x128xbf16>, vector<128x1xbf16>, vector<16x1xf32> -> vector<16x1xf32>
    %101 = arith.negf %100 : vector<16x1xf32>
    %102 = math.exp %101 : vector<16x1xf32>
    %cst_37 = arith.constant 1.000000e+00 : f32
    %103 = vector.broadcast %cst_37 : f32 to vector<16x1xf32>
    %104 = arith.addf %103, %102 : vector<16x1xf32>
    %105 = arith.divf %103, %104 : vector<16x1xf32>
    %106 = vector.broadcast %105 : vector<16x1xf32> to vector<16x128xf32>
    %107 = arith.mulf %106, %98 : vector<16x128xf32>
    %108 = arith.addf %97, %107 : vector<16x128xf32>
    %cst_38 = arith.constant dense<0.000000e+00> : vector<16x128xf32>
    %109 = tpu.matmul %10, %99, %cst_38 {dimension_numbers = #tpu.dot_dimension_numbers<[1], [0], [0], [1], [0, 0, 1, 1], [], []>} : vector<16x16xbf16>, vector<16x128xbf16>, vector<16x128xf32> -> vector<16x128xf32>
    %110 = arith.truncf %109 : vector<16x128xf32> to vector<16x128xbf16>
    %cst_39 = arith.constant dense<0.000000e+00> : vector<16x1xf32>
    %111 = tpu.matmul %110, %11, %cst_39 {dimension_numbers = #tpu.dot_dimension_numbers<[1], [0], [0], [1], [0, 0, 1, 1], [], []>} : vector<16x128xbf16>, vector<128x1xbf16>, vector<16x1xf32> -> vector<16x1xf32>
    %112 = arith.negf %111 : vector<16x1xf32>
    %113 = math.exp %112 : vector<16x1xf32>
    %cst_40 = arith.constant 1.000000e+00 : f32
    %114 = vector.broadcast %cst_40 : f32 to vector<16x1xf32>
    %115 = arith.addf %114, %113 : vector<16x1xf32>
    %116 = arith.divf %114, %115 : vector<16x1xf32>
    %117 = vector.broadcast %116 : vector<16x1xf32> to vector<16x128xf32>
    %118 = arith.mulf %117, %109 : vector<16x128xf32>
    %119 = arith.addf %108, %118 : vector<16x128xf32>
    %cst_41 = arith.constant dense<0.000000e+00> : vector<16x128xf32>
    %120 = tpu.matmul %10, %110, %cst_41 {dimension_numbers = #tpu.dot_dimension_numbers<[1], [0], [0], [1], [0, 0, 1, 1], [], []>} : vector<16x16xbf16>, vector<16x128xbf16>, vector<16x128xf32> -> vector<16x128xf32>
    %121 = arith.truncf %120 : vector<16x128xf32> to vector<16x128xbf16>
    %cst_42 = arith.constant dense<0.000000e+00> : vector<16x1xf32>
    %122 = tpu.matmul %121, %11, %cst_42 {dimension_numbers = #tpu.dot_dimension_numbers<[1], [0], [0], [1], [0, 0, 1, 1], [], []>} : vector<16x128xbf16>, vector<128x1xbf16>, vector<16x1xf32> -> vector<16x1xf32>
    %123 = arith.negf %122 : vector<16x1xf32>
    %124 = math.exp %123 : vector<16x1xf32>
    %cst_43 = arith.constant 1.000000e+00 : f32
    %125 = vector.broadcast %cst_43 : f32 to vector<16x1xf32>
    %126 = arith.addf %125, %124 : vector<16x1xf32>
    %127 = arith.divf %125, %126 : vector<16x1xf32>
    %128 = vector.broadcast %127 : vector<16x1xf32> to vector<16x128xf32>
    %129 = arith.mulf %128, %120 : vector<16x128xf32>
    %130 = arith.addf %119, %129 : vector<16x128xf32>
    %c0_44 = arith.constant 0 : index
    %c0_45 = arith.constant 0 : index
    %131 = vector.load %arg5[%c0_44, %c0_45] : memref<16x128xf32, #tpu.memory_space<vmem>>, vector<16x128xf32>
    tpu.vector_store %arg5[%c0_44, %c0_45], %130 {strides = array<i32>} : memref<16x128xf32, #tpu.memory_space<vmem>>, vector<16x128xf32>,
    return
  }
}

</mosaic_0001>

<bundles_post_ra>
// kernel: _dagnn_forward_padded.1
= control target key start
LH: loop header
LB: loop body
LE: loop exit
PB: predicated region body
PF: predicated region fallthrough
CT: control target
= control target key end

     0   :  { %vm44_vm0 = vcmask 261120   ;;  %vm281_vm1 = vcmask 130048   ;;  %v1326_v30 = vmov 0   ;;  %s1643_s2 = inlined_call_operand.vmem [shape: bf16[32,128], index: 2, kind: input, shape index: {}]   ;;  %s1644_s3 = inlined_call_operand.vmem [shape: bf16[128,128], index: 3, kind: input, shape index: {}]   ;;  %s1645_s0 = inlined_call_operand.vmem [shape: bf16[16,32], index: 0, kind: input, shape index: {}]   ;;  %s1646_s4 = inlined_call_operand.vmem [shape: bf16[128,1], index: 4, kind: input, shape index: {}]   ;;  %s1647_s1 = inlined_call_operand.vmem [shape: bf16[16,16], index: 1, kind: input, shape index: {}]   ;;  %s1648_s5 = inlined_call_operand.vmem [shape: f32[16,128], index: 5, kind: output, shape index: {}]  }
   0x1   :  { %v1216_v0 = vld [vmem:[%s1643_s2 + $0x8] sm:$0xff]  ;;  %v1224_v1 = vld [vmem:[%s1644_s3 + $0x38] sm:$0xff]  ;;  %v1215_v2 = vld [vmem:[%s1643_s2] sm:$0xff]  ;;  %1235 = vset.pattern.permute.xlu0 %v1326_v30  ;;  %1236 = vset.pattern.permute.xlu1 %v1326_v30 }
   0x2   :  { %54 = vmatpush.bf16.msra.mxu0 %v1216_v0  ;;  %129 = vmatpush.bf16.msra.mxu1 %v1224_v1  ;;  %v1223_v3 = vld [vmem:[%s1644_s3 + $0x30] sm:$0xff]  ;;  %v1214_v4 = vld [vmem:[%s1645_s0] sm:$0xff]  ;;  %v1222_v5 = vld [vmem:[%s1644_s3 + $0x28] sm:$0xff] }
   0x3   :  { %v1221_v6 = vld [vmem:[%s1644_s3 + $0x20] sm:$0xff]  ;;  %v1220_v7 = vld [vmem:[%s1644_s3 + $0x18] sm:$0xff]  ;;  %v1219_v8 = vld [vmem:[%s1644_s3 + $0x10] sm:$0xff]  ;;  %1237 = vset.pattern.permute.xlu2 %v1326_v30 }
   0x4   :  { %v1218_v9 = vld [vmem:[%s1644_s3 + $0x8] sm:$0xff]  ;;  %v1217_v10 = vld [vmem:[%s1644_s3] sm:$0xff]  ;;  %v1393_v11 = vld [vmem:[%s1646_s4 + $0x38] sm:$0xff] }
   0x5   :  { %212 = vmatpush.bf16.msra.mxu2 %v1393_v11  ;;  %v1399_v12 = vld [vmem:[%s1646_s4 + $0x30] sm:$0xff]  ;;  %300 = vmatpush.bf16.msra.mxu3 %v1393_v11  ;;  %v1406_v13 = vld [vmem:[%s1646_s4 + $0x28] sm:$0xff]  ;;  %v1413_v14 = vld [vmem:[%s1646_s4 + $0x20] sm:$0xff] }
   0x6   :  { %55 = vmatpush.bf16.msra.mxu0 %v1215_v2  ;;  %130 = vmatpush.bf16.msra.mxu1 %v1223_v3  ;;  %v1420_v15 = vld [vmem:[%s1646_s4 + $0x18] sm:$0xff]  ;;  %v1428_v21 = vld [vmem:[%s1646_s4 + $0x10] sm:$0xff]  ;;  %v1434_v22 = vld [vmem:[%s1646_s4 + $0x8] sm:$0xff] }
   0x7   :  { %v1442_v23 = vld [vmem:[%s1646_s4] sm:$0xff] }
   0x8   :  { %v1467_v29 = vld [vmem:[%s1647_s1] sm:$0xff] }
   0x9   :  { %1113 = vmatmul.msk.bf16.vlgmr.msra.gmra.mxu0 %vm44_vm0, %v1214_v4  ;;  %213 = vmatpush.bf16.msra.mxu2 %v1399_v12 }
   0xa   :  { %131 = vmatpush.bf16.msra.mxu1 %v1222_v5  ;;  %301 = vmatpush.bf16.msra.mxu3 %v1399_v12 }
   0xd   :  { %214 = vmatpush.bf16.msra.mxu2 %v1406_v13 }
   0xe   :  { %132 = vmatpush.bf16.msra.mxu1 %v1221_v6  ;;  %302 = vmatpush.bf16.msra.mxu3 %v1406_v13 }
  0x11   :  { %215 = vmatpush.bf16.msra.mxu2 %v1413_v14 }
  0x12   :  { %133 = vmatpush.bf16.msra.mxu1 %v1220_v7  ;;  %303 = vmatpush.bf16.msra.mxu3 %v1413_v14 }
  0x15   :  { %216 = vmatpush.bf16.msra.mxu2 %v1420_v15 }
  0x16   :  { %134 = vmatpush.bf16.msra.mxu1 %v1219_v8  ;;  %304 = vmatpush.bf16.msra.mxu3 %v1420_v15 }
  0x19   :  { %217 = vmatpush.bf16.msra.mxu2 %v1428_v21 }
  0x1a   :  { %135 = vmatpush.bf16.msra.mxu1 %v1218_v9  ;;  %305 = vmatpush.bf16.msra.mxu3 %v1428_v21 }
  0x1d   :  { %218 = vmatpush.bf16.msra.mxu2 %v1434_v22 }
  0x1e   :  { %136 = vmatpush.bf16.msra.mxu1 %v1217_v10  ;;  %306 = vmatpush.bf16.msra.mxu3 %v1434_v22 }
  0x21   :  { %219 = vmatpush.bf16.msra.mxu2 %v1442_v23 }
  0x22   :  { %307 = vmatpush.bf16.msra.mxu3 %v1442_v23 }
  0x25   :  { %462 = vmatpush.bf16.msrb.mxu2 %v1393_v11 }
  0x29   :  { %463 = vmatpush.bf16.msrb.mxu2 %v1399_v12 }
  0x2d   :  { %464 = vmatpush.bf16.msrb.mxu2 %v1406_v13 }
  0x31   :  { %465 = vmatpush.bf16.msrb.mxu2 %v1413_v14 }
  0x35   :  { %466 = vmatpush.bf16.msrb.mxu2 %v1420_v15 }
  0x39   :  { %467 = vmatpush.bf16.msrb.mxu2 %v1428_v21 }
  0x3d   :  { %468 = vmatpush.bf16.msrb.mxu2 %v1434_v22 }
  0x41   :  { %469 = vmatpush.bf16.msrb.mxu2 %v1442_v23 }
  0x86   :  { %v57_v16 = vpop.f32.mrf.mxu0 }
  0x87   :  { %v62_v18 = vmax.f32 %v57_v16, 0.0 }
  0x8e   :  { %v59_v17 = vpop.f32.mrf.mxu0 }
  0x8f   :  { %v63_v19 = vmax.f32 %v59_v17, 0.0 }
  0x91   :  { %v64_v20 = vpack.c.bf16 %v63_v19, %v62_v18 }
  0x93   :  { %137 = vmatmul.bf16.vlgmr.msra.gmra.mxu1 %v64_v20 }
 0x110   :  { %v1452_v24 = vpop.f32.mrf.mxu1 }
 0x111   :  { %v143_v26 = vmax.f32 %v1452_v24, 0.0 }
 0x118   :  { %v1456_v25 = vpop.f32.mrf.mxu1 }
 0x119   :  { %v144_v27 = vmax.f32 %v1456_v25, 0.0 }
 0x11b   :  { %v163_v28 = vpack.c.bf16 %v144_v27, %v143_v26 }
 0x11d   :  { %220 = vmatmul.bf16.vlgmr.msra.gmra.mxu2 %v163_v28  ;;  %292 = vmatpush.bf16.msrb.mxu1 %v163_v28 }
 0x120   :  { %1184 = vmatmul.msk.bf16.vlgmr.msrb.gmra.mxu1 %vm281_vm1, %v1467_v29 }
 0x19d   :  { %v1471_v31 = vpop.f32.mrf.mxu1 }
 0x1a0   :  { %v221_v32 = vpop.f32.mrf.mxu2 }
 0x1a1   :  { %v1178_v33 = vmul.f32 -1.442695, %v221_v32 }
 0x1a3   :  { %1238 = vpow2.f32 %v1178_v33 }
 0x1a5   :  { %v1473_v34 = vpop.f32.mrf.mxu1 }
 0x1a6   :  { %v299_v35 = vpack.c.bf16 %v1473_v34, %v1471_v31 }
 0x1a8   :  { %v223_v36 = vpop.f32.mrf.mxu2  ;;  %308 = vmatmul.bf16.vlgmr.msra.gmra.mxu3 %v299_v35  ;;  %373 = vmatpush.bf16.msrb.mxu0 %v299_v35 }
 0x1a9   :  { %v1239_v37 = vpop.eup %1238  ;;  %v1179_v38 = vmul.f32 -1.442695, %v223_v36 }
 0x1aa   :  { %v232_v39 = vadd.f32 1.0, %v1239_v37 }
 0x1ab   :  { %1240 = vpow2.f32 %v1179_v38  ;;  %1187 = vmatmul.msk.bf16.vlgmr.msrb.gmra.mxu0 %vm281_vm1, %v1467_v29 }
 0x1ac   :  { %381 = vmatpush.bf16.msra.mxu0 %v1393_v11  ;;  %1242 = vrcp.f32 %v232_v39  ;;  %v245_v45 = vand.u32 2147483648, %v232_v39  ;;  %v243_v47 = vand.u32 2147483647, %v232_v39  ;;  %vm239_vm3 = vweird.f32 %v232_v39 }
 0x1ae   :  { %v246_v50 = vor.u32 1.1754944e-38, %v245_v45  ;;  %vm244_vm5 = vcmp.eq.f32.partialorder %v243_v47, 8.507059e+37 }
 0x1b0   :  { %382 = vmatpush.bf16.msra.mxu0 %v1399_v12 }
 0x1b1   :  { %v1241_v40 = vpop.eup %1240 }
 0x1b2   :  { %v1243_v41 = vpop.eup %1242  ;;  %v233_v42 = vadd.f32 1.0, %v1241_v40 }
 0x1b3   :  { %v235_v43 = vmul.f32 %v1243_v41, %v232_v39  ;;  %vm240_vm2 = vweird.f32 %v1243_v41 }
 0x1b4   :  { %383 = vmatpush.bf16.msra.mxu0 %v1406_v13  ;;  %1244 = vrcp.f32 %v233_v42  ;;  %vm241_vm4 = vmor %vm239_vm3, %vm240_vm2  ;;  %v260_v55 = vand.u32 2147483648, %v233_v42  ;;  %v258_v57 = vand.u32 2147483647, %v233_v42  ;;  %vm254_vm7 = vweird.f32 %v233_v42 }
 0x1b5   :  { %v236_v44 = vsub.f32 1.0, %v235_v43 }
 0x1b6   :  { %v261_v59 = vor.u32 1.1754944e-38, %v260_v55  ;;  %vm259_vm9 = vcmp.eq.f32.partialorder %v258_v57, 8.507059e+37 }
 0x1b7   :  { %v237_v46 = vmul.f32 %v1243_v41, %v236_v44 }
 0x1b8   :  { %384 = vmatpush.bf16.msra.mxu0 %v1413_v14 }
 0x1b9   :  { %v238_v48 = vadd.f32 %v1243_v41, %v237_v46 }
 0x1ba   :  { %v1245_v49 = vpop.eup %1244 }
 0x1bb   :  { %v242_v51 = vsel %vm241_vm4, %v1243_v41, %v238_v48  ;;  %v250_v52 = vmul.f32 %v1245_v49, %v233_v42  ;;  %vm255_vm6 = vweird.f32 %v1245_v49 }
 0x1bc   :  { %385 = vmatpush.bf16.msra.mxu0 %v1420_v15  ;;  %v247_v53 = vsel %vm244_vm5, %v246_v50, %v242_v51  ;;  %vm256_vm8 = vmor %vm254_vm7, %vm255_vm6 }
 0x1bd   :  { %266 = vperm.xlu0 %1235, %v247_v53   ;;  %v251_v54 = vsub.f32 1.0, %v250_v52 }
 0x1bf   :  { %v252_v56 = vmul.f32 %v1245_v49, %v251_v54 }
 0x1c0   :  { %386 = vmatpush.bf16.msra.mxu0 %v1428_v21 }
 0x1c1   :  { %v253_v58 = vadd.f32 %v1245_v49, %v252_v56 }
 0x1c3   :  { %v257_v60 = vsel %vm256_vm8, %v1245_v49, %v253_v58 }
 0x1c4   :  { %387 = vmatpush.bf16.msra.mxu0 %v1434_v22  ;;  %v262_v61 = vsel %vm259_vm9, %v261_v59, %v257_v60 }
 0x1c5   :  { %271 = vperm.xlu0 %1235, %v262_v61  }
 0x1c8   :  { %388 = vmatpush.bf16.msra.mxu0 %v1442_v23 }
 0x1cc   :  { %624 = vmatpush.bf16.msrb.mxu0 %v1393_v11 }
 0x1d0   :  { %625 = vmatpush.bf16.msrb.mxu0 %v1399_v12 }
 0x1d4   :  { %626 = vmatpush.bf16.msrb.mxu0 %v1406_v13 }
 0x1d8   :  { %627 = vmatpush.bf16.msrb.mxu0 %v1413_v14 }
 0x1dc   :  { %628 = vmatpush.bf16.msrb.mxu0 %v1420_v15 }
 0x1e0   :  { %629 = vmatpush.bf16.msrb.mxu0 %v1428_v21 }
 0x1e4   :  { %630 = vmatpush.bf16.msrb.mxu0 %v1434_v22 }
 0x1e8   :  { %631 = vmatpush.bf16.msrb.mxu0 %v1442_v23 }
 0x228   :  { %v1495_v62 = vpop.f32.mrf.mxu0 }
 0x22b   :  { %v309_v63 = vpop.f32.mrf.mxu3 }
 0x22c   :  { %v1185_v0 = vmul.f32 -1.442695, %v309_v63 }
 0x22e   :  { %1246 = vpow2.f32 %v1185_v0 }
 0x230   :  { %v1497_v1 = vpop.f32.mrf.mxu0 }
 0x231   :  { %v380_v2 = vpack.c.bf16 %v1497_v1, %v1495_v62 }
 0x233   :  { %v311_v3 = vpop.f32.mrf.mxu3  ;;  %389 = vmatmul.bf16.vlgmr.msra.gmra.mxu0 %v380_v2  ;;  %454 = vmatpush.bf16.msra.mxu1 %v380_v2 }
 0x234   :  { %v1247_v4 = vpop.eup %1246  ;;  %v1186_v5 = vmul.f32 -1.442695, %v311_v3 }
 0x235   :  { %v320_v6 = vadd.f32 1.0, %v1247_v4 }
 0x236   :  { %1248 = vpow2.f32 %v1186_v5  ;;  %1190 = vmatmul.msk.bf16.vlgmr.msra.gmra.mxu1 %vm281_vm1, %v1467_v29 }
 0x237   :  { %543 = vmatpush.bf16.msrb.mxu1 %v1393_v11  ;;  %1250 = vrcp.f32 %v320_v6  ;;  %v333_v17 = vand.u32 2147483648, %v320_v6  ;;  %v331_v19 = vand.u32 2147483647, %v320_v6  ;;  %vm327_vm11 = vweird.f32 %v320_v6 }
 0x239   :  { %v334_v30 = vor.u32 1.1754944e-38, %v333_v17  ;;  %vm332_vm13 = vcmp.eq.f32.partialorder %v331_v19, 8.507059e+37 }
 0x23b   :  { %544 = vmatpush.bf16.msrb.mxu1 %v1399_v12 }
 0x23c   :  { %v1249_v7 = vpop.eup %1248 }
 0x23d   :  { %v1251_v8 = vpop.eup %1250  ;;  %v321_v9 = vadd.f32 1.0, %v1249_v7 }
 0x23e   :  { %v323_v10 = vmul.f32 %v1251_v8, %v320_v6  ;;  %vm328_vm10 = vweird.f32 %v1251_v8 }
 0x23f   :  { %545 = vmatpush.bf16.msrb.mxu1 %v1406_v13  ;;  %1252 = vrcp.f32 %v321_v9  ;;  %vm329_vm12 = vmor %vm327_vm11, %vm328_vm10  ;;  %v348_v37 = vand.u32 2147483648, %v321_v9  ;;  %v346_v39 = vand.u32 2147483647, %v321_v9  ;;  %vm342_vm15 = vweird.f32 %v321_v9 }
 0x240   :  { %v324_v16 = vsub.f32 1.0, %v323_v10 }
 0x241   :  { %v349_v41 = vor.u32 1.1754944e-38, %v348_v37  ;;  %vm347_vm2 = vcmp.eq.f32.partialorder %v346_v39, 8.507059e+37 }
 0x242   :  { %v325_v18 = vmul.f32 %v1251_v8, %v324_v16 }
 0x243   :  { %546 = vmatpush.bf16.msrb.mxu1 %v1413_v14 }
 0x244   :  { %v326_v20 = vadd.f32 %v1251_v8, %v325_v18 }
 0x245   :  { %v1253_v28 = vpop.eup %1252 }
 0x246   :  { %v330_v32 = vsel %vm329_vm12, %v1251_v8, %v326_v20  ;;  %v338_v33 = vmul.f32 %v1253_v28, %v321_v9  ;;  %vm343_vm14 = vweird.f32 %v1253_v28 }
 0x247   :  { %547 = vmatpush.bf16.msrb.mxu1 %v1420_v15  ;;  %v335_v35 = vsel %vm332_vm13, %v334_v30, %v330_v32  ;;  %vm344_vm0 = vmor %vm342_vm15, %vm343_vm14 }
 0x248   :  { %354 = vperm.xlu1 %1236, %v335_v35   ;;  %v339_v36 = vsub.f32 1.0, %v338_v33 }
 0x24a   :  { %v340_v38 = vmul.f32 %v1253_v28, %v339_v36 }
 0x24b   :  { %548 = vmatpush.bf16.msrb.mxu1 %v1428_v21 }
 0x24c   :  { %v341_v40 = vadd.f32 %v1253_v28, %v340_v38 }
 0x24e   :  { %v345_v42 = vsel %vm344_vm0, %v1253_v28, %v341_v40 }
 0x24f   :  { %549 = vmatpush.bf16.msrb.mxu1 %v1434_v22  ;;  %v350_v43 = vsel %vm347_vm2, %v349_v41, %v345_v42 }
 0x250   :  { %359 = vperm.xlu1 %1236, %v350_v43  }
 0x253   :  { %550 = vmatpush.bf16.msrb.mxu1 %v1442_v23 }
 0x2b0   :  { %v390_v44 = vpop.f32.mrf.mxu0 }
 0x2b1   :  { %v1188_v45 = vmul.f32 -1.442695, %v390_v44 }
 0x2b3   :  { %1254 = vpow2.f32 %v1188_v45  ;;  %v1511_v46 = vpop.f32.mrf.mxu1 }
 0x2b8   :  { %v392_v47 = vpop.f32.mrf.mxu0 }
 0x2b9   :  { %v1255_v48 = vpop.eup %1254  ;;  %v1189_v49 = vmul.f32 -1.442695, %v392_v47 }
 0x2ba   :  { %v401_v50 = vadd.f32 1.0, %v1255_v48 }
 0x2bb   :  { %1256 = vpow2.f32 %v1189_v49  ;;  %v1513_v51 = vpop.f32.mrf.mxu1 }
 0x2bc   :  { %1258 = vrcp.f32 %v401_v50  ;;  %v461_v52 = vpack.c.bf16 %v1513_v51, %v1511_v46  ;;  %v414_v58 = vand.u32 2147483648, %v401_v50  ;;  %v412_v60 = vand.u32 2147483647, %v401_v50 }
 0x2bd   :  { %vm408_vm4 = vweird.f32 %v401_v50 }
 0x2be   :  { %470 = vmatmul.bf16.vlgmr.msrb.gmra.mxu2 %v461_v52  ;;  %535 = vmatpush.bf16.msrb.mxu3 %v461_v52  ;;  %v415_v0 = vor.u32 1.1754944e-38, %v414_v58  ;;  %vm413_vm6 = vcmp.eq.f32.partialorder %v412_v60, 8.507059e+37 }
 0x2c1   :  { %v1257_v53 = vpop.eup %1256  ;;  %1193 = vmatmul.msk.bf16.vlgmr.msrb.gmra.mxu3 %vm281_vm1, %v1467_v29 }
 0x2c2   :  { %v1259_v54 = vpop.eup %1258  ;;  %v402_v55 = vadd.f32 1.0, %v1257_v53 }
 0x2c3   :  { %v404_v56 = vmul.f32 %v1259_v54, %v401_v50  ;;  %vm409_vm3 = vweird.f32 %v1259_v54 }
 0x2c4   :  { %1260 = vrcp.f32 %v402_v55  ;;  %vm410_vm5 = vmor %vm408_vm4, %vm409_vm3  ;;  %v429_v6 = vand.u32 2147483648, %v402_v55  ;;  %v427_v8 = vand.u32 2147483647, %v402_v55  ;;  %vm423_vm8 = vweird.f32 %v402_v55 }
 0x2c5   :  { %v405_v57 = vsub.f32 1.0, %v404_v56 }
 0x2c6   :  { %v430_v10 = vor.u32 1.1754944e-38, %v429_v6  ;;  %vm428_vm10 = vcmp.eq.f32.partialorder %v427_v8, 8.507059e+37 }
 0x2c7   :  { %v406_v59 = vmul.f32 %v1259_v54, %v405_v57 }
 0x2c9   :  { %v407_v61 = vadd.f32 %v1259_v54, %v406_v59 }
 0x2ca   :  { %v1261_v63 = vpop.eup %1260 }
 0x2cb   :  { %v411_v2 = vsel %vm410_vm5, %v1259_v54, %v407_v61  ;;  %v419_v3 = vmul.f32 %v1261_v63, %v402_v55  ;;  %vm424_vm7 = vweird.f32 %v1261_v63 }
 0x2cc   :  { %v416_v4 = vsel %vm413_vm6, %v415_v0, %v411_v2  ;;  %vm425_vm9 = vmor %vm423_vm8, %vm424_vm7 }
 0x2cd   :  { %435 = vperm.xlu2 %1237, %v416_v4   ;;  %v420_v5 = vsub.f32 1.0, %v419_v3 }
 0x2cf   :  { %v421_v7 = vmul.f32 %v1261_v63, %v420_v5 }
 0x2d1   :  { %v422_v9 = vadd.f32 %v1261_v63, %v421_v7 }
 0x2d3   :  { %v426_v16 = vsel %vm425_vm9, %v1261_v63, %v422_v9 }
 0x2d4   :  { %v431_v17 = vsel %vm428_vm10, %v430_v10, %v426_v16 }
 0x2d5   :  { %440 = vperm.xlu2 %1237, %v431_v17  }
 0x341   :  { %v471_v18 = vpop.f32.mrf.mxu2 }
 0x342   :  { %v1191_v19 = vmul.f32 -1.442695, %v471_v18 }
 0x344   :  { %1262 = vpow2.f32 %v1191_v19  ;;  %v1519_v20 = vpop.f32.mrf.mxu3 }
 0x349   :  { %v473_v28 = vpop.f32.mrf.mxu2 }
 0x34a   :  { %v1263_v30 = vpop.eup %1262  ;;  %v1192_v32 = vmul.f32 -1.442695, %v473_v28 }
 0x34b   :  { %v482_v33 = vadd.f32 1.0, %v1263_v30 }
 0x34c   :  { %1264 = vpow2.f32 %v1192_v32  ;;  %v1521_v35 = vpop.f32.mrf.mxu3 }
 0x34d   :  { %1266 = vrcp.f32 %v482_v33  ;;  %v542_v36 = vpack.c.bf16 %v1521_v35, %v1519_v20  ;;  %v495_v42 = vand.u32 2147483648, %v482_v33  ;;  %v493_v44 = vand.u32 2147483647, %v482_v33 }
 0x34e   :  { %vm489_vm12 = vweird.f32 %v482_v33 }
 0x34f   :  { %551 = vmatmul.bf16.vlgmr.msrb.gmra.mxu1 %v542_v36  ;;  %616 = vmatpush.bf16.msra.mxu3 %v542_v36  ;;  %v496_v48 = vor.u32 1.1754944e-38, %v495_v42  ;;  %vm494_vm14 = vcmp.eq.f32.partialorder %v493_v44, 8.507059e+37 }
 0x352   :  { %v1265_v37 = vpop.eup %1264  ;;  %1196 = vmatmul.msk.bf16.vlgmr.msra.gmra.mxu3 %vm281_vm1, %v1467_v29 }
 0x353   :  { %705 = vmatpush.bf16.msrb.mxu3 %v1393_v11  ;;  %v1267_v38 = vpop.eup %1266  ;;  %v483_v39 = vadd.f32 1.0, %v1265_v37 }
 0x354   :  { %v485_v40 = vmul.f32 %v1267_v38, %v482_v33  ;;  %vm490_vm11 = vweird.f32 %v1267_v38 }
 0x355   :  { %1268 = vrcp.f32 %v483_v39  ;;  %vm491_vm13 = vmor %vm489_vm12, %vm490_vm11  ;;  %v510_v54 = vand.u32 2147483648, %v483_v39  ;;  %v508_v56 = vand.u32 2147483647, %v483_v39  ;;  %vm504_vm0 = vweird.f32 %v483_v39 }
 0x356   :  { %v486_v41 = vsub.f32 1.0, %v485_v40 }
 0x357   :  { %706 = vmatpush.bf16.msrb.mxu3 %v1399_v12  ;;  %v511_v58 = vor.u32 1.1754944e-38, %v510_v54  ;;  %vm509_vm3 = vcmp.eq.f32.partialorder %v508_v56, 8.507059e+37 }
 0x358   :  { %v487_v43 = vmul.f32 %v1267_v38, %v486_v41 }
 0x35a   :  { %v488_v45 = vadd.f32 %v1267_v38, %v487_v43 }
 0x35b   :  { %707 = vmatpush.bf16.msrb.mxu3 %v1406_v13  ;;  %v1269_v47 = vpop.eup %1268 }
 0x35c   :  { %v492_v49 = vsel %vm491_vm13, %v1267_v38, %v488_v45  ;;  %v500_v50 = vmul.f32 %v1269_v47, %v483_v39  ;;  %vm505_vm15 = vweird.f32 %v1269_v47 }
 0x35d   :  { %v497_v52 = vsel %vm494_vm14, %v496_v48, %v492_v49  ;;  %vm506_vm2 = vmor %vm504_vm0, %vm505_vm15 }
 0x35e   :  { %516 = vperm.xlu0 %1235, %v497_v52   ;;  %v501_v53 = vsub.f32 1.0, %v500_v50 }
 0x35f   :  { %708 = vmatpush.bf16.msrb.mxu3 %v1413_v14 }
 0x360   :  { %v502_v55 = vmul.f32 %v1269_v47, %v501_v53 }
 0x362   :  { %v503_v57 = vadd.f32 %v1269_v47, %v502_v55 }
 0x363   :  { %709 = vmatpush.bf16.msrb.mxu3 %v1420_v15 }
 0x364   :  { %v507_v59 = vsel %vm506_vm2, %v1269_v47, %v503_v57 }
 0x365   :  { %v512_v60 = vsel %vm509_vm3, %v511_v58, %v507_v59 }
 0x366   :  { %521 = vperm.xlu1 %1236, %v512_v60  }
 0x367   :  { %710 = vmatpush.bf16.msrb.mxu3 %v1428_v21 }
 0x36b   :  { %711 = vmatpush.bf16.msrb.mxu3 %v1434_v22 }
 0x36f   :  { %712 = vmatpush.bf16.msrb.mxu3 %v1442_v23 }
 0x3cc   :  { %v552_v61 = vpop.f32.mrf.mxu1 }
 0x3cd   :  { %v1194_v63 = vmul.f32 -1.442695, %v552_v61 }
 0x3cf   :  { %1270 = vpow2.f32 %v1194_v63 }
 0x3d4   :  { %v554_v0 = vpop.f32.mrf.mxu1 }
 0x3d5   :  { %v1271_v2 = vpop.eup %1270  ;;  %v1195_v3 = vmul.f32 -1.442695, %v554_v0  ;;  %v1535_v4 = vpop.f32.mrf.mxu3 }
 0x3d6   :  { %v563_v5 = vadd.f32 1.0, %v1271_v2 }
 0x3d7   :  { %1272 = vpow2.f32 %v1195_v3 }
 0x3d8   :  { %1274 = vrcp.f32 %v563_v5  ;;  %v576_v18 = vand.u32 2147483648, %v563_v5  ;;  %v574_v28 = vand.u32 2147483647, %v563_v5  ;;  %vm570_vm5 = vweird.f32 %v563_v5 }
 0x3da   :  { %v577_v33 = vor.u32 1.1754944e-38, %v576_v18  ;;  %vm575_vm7 = vcmp.eq.f32.partialorder %v574_v28, 8.507059e+37 }
 0x3dd   :  { %v1273_v6 = vpop.eup %1272  ;;  %v1537_v7 = vpop.f32.mrf.mxu3 }
 0x3de   :  { %v1275_v8 = vpop.eup %1274  ;;  %v564_v9 = vadd.f32 1.0, %v1273_v6  ;;  %v623_v10 = vpack.c.bf16 %v1537_v7, %v1535_v4 }
 0x3df   :  { %v566_v16 = vmul.f32 %v1275_v8, %v563_v5  ;;  %vm571_vm4 = vweird.f32 %v1275_v8 }
 0x3e0   :  { %1276 = vrcp.f32 %v564_v9  ;;  %632 = vmatmul.bf16.vlgmr.msrb.gmra.mxu0 %v623_v10  ;;  %697 = vmatpush.bf16.msra.mxu2 %v623_v10  ;;  %vm572_vm6 = vmor %vm570_vm5, %vm571_vm4  ;;  %v591_v40 = vand.u32 2147483648, %v564_v9  ;;  %v589_v42 = vand.u32 2147483647, %v564_v9  ;;  %vm585_vm9 = vweird.f32 %v564_v9 }
 0x3e1   :  { %v567_v17 = vsub.f32 1.0, %v566_v16 }
 0x3e2   :  { %v592_v44 = vor.u32 1.1754944e-38, %v591_v40  ;;  %vm590_vm11 = vcmp.eq.f32.partialorder %v589_v42, 8.507059e+37 }
 0x3e3   :  { %1199 = vmatmul.msk.bf16.vlgmr.msra.gmra.mxu2 %vm281_vm1, %v1467_v29  ;;  %v568_v19 = vmul.f32 %v1275_v8, %v567_v17 }
 0x3e4   :  { %786 = vmatpush.bf16.msrb.mxu2 %v1393_v11 }
 0x3e5   :  { %v569_v30 = vadd.f32 %v1275_v8, %v568_v19 }
 0x3e6   :  { %v1277_v32 = vpop.eup %1276 }
 0x3e7   :  { %v573_v36 = vsel %vm572_vm6, %v1275_v8, %v569_v30  ;;  %v581_v37 = vmul.f32 %v1277_v32, %v564_v9  ;;  %vm586_vm8 = vweird.f32 %v1277_v32 }
 0x3e8   :  { %787 = vmatpush.bf16.msrb.mxu2 %v1399_v12  ;;  %v578_v38 = vsel %vm575_vm7, %v577_v33, %v573_v36  ;;  %vm587_vm10 = vmor %vm585_vm9, %vm586_vm8 }
 0x3e9   :  { %597 = vperm.xlu2 %1237, %v578_v38   ;;  %v582_v39 = vsub.f32 1.0, %v581_v37 }
 0x3eb   :  { %v583_v41 = vmul.f32 %v1277_v32, %v582_v39 }
 0x3ec   :  { %788 = vmatpush.bf16.msrb.mxu2 %v1406_v13 }
 0x3ed   :  { %v584_v43 = vadd.f32 %v1277_v32, %v583_v41 }
 0x3ef   :  { %v588_v45 = vsel %vm587_vm10, %v1277_v32, %v584_v43 }
 0x3f0   :  { %789 = vmatpush.bf16.msrb.mxu2 %v1413_v14  ;;  %v593_v47 = vsel %vm590_vm11, %v592_v44, %v588_v45 }
 0x3f1   :  { %602 = vperm.xlu0 %1235, %v593_v47  }
 0x3f4   :  { %790 = vmatpush.bf16.msrb.mxu2 %v1420_v15 }
 0x3f8   :  { %791 = vmatpush.bf16.msrb.mxu2 %v1428_v21 }
 0x3fc   :  { %792 = vmatpush.bf16.msrb.mxu2 %v1434_v22 }
 0x400   :  { %793 = vmatpush.bf16.msrb.mxu2 %v1442_v23 }
 0x45d   :  { %v633_v48 = vpop.f32.mrf.mxu0 }
 0x45e   :  { %v1197_v49 = vmul.f32 -1.442695, %v633_v48 }
 0x460   :  { %1278 = vpow2.f32 %v1197_v49 }
 0x465   :  { %v635_v50 = vpop.f32.mrf.mxu0 }
 0x466   :  { %v1279_v52 = vpop.eup %1278  ;;  %v1198_v53 = vmul.f32 -1.442695, %v635_v50  ;;  %v1551_v54 = vpop.f32.mrf.mxu2 }
 0x467   :  { %v644_v55 = vadd.f32 1.0, %v1279_v52 }
 0x468   :  { %1280 = vpow2.f32 %v1198_v53 }
 0x469   :  { %1282 = vrcp.f32 %v644_v55  ;;  %v657_v0 = vand.u32 2147483648, %v644_v55  ;;  %v655_v3 = vand.u32 2147483647, %v644_v55  ;;  %vm651_vm13 = vweird.f32 %v644_v55 }
 0x46b   :  { %v658_v8 = vor.u32 1.1754944e-38, %v657_v0  ;;  %vm656_vm15 = vcmp.eq.f32.partialorder %v655_v3, 8.507059e+37 }
 0x46e   :  { %v1281_v56 = vpop.eup %1280  ;;  %v1553_v57 = vpop.f32.mrf.mxu2 }
 0x46f   :  { %v1283_v58 = vpop.eup %1282  ;;  %v645_v59 = vadd.f32 1.0, %v1281_v56  ;;  %v704_v60 = vpack.c.bf16 %v1553_v57, %v1551_v54 }
 0x470   :  { %v647_v61 = vmul.f32 %v1283_v58, %v644_v55  ;;  %vm652_vm12 = vweird.f32 %v1283_v58 }
 0x471   :  { %1284 = vrcp.f32 %v645_v59  ;;  %713 = vmatmul.bf16.vlgmr.msrb.gmra.mxu3 %v704_v60  ;;  %778 = vmatpush.bf16.msra.mxu1 %v704_v60  ;;  %vm653_vm14 = vmor %vm651_vm13, %vm652_vm12  ;;  %v672_v18 = vand.u32 2147483648, %v645_v59  ;;  %v670_v28 = vand.u32 2147483647, %v645_v59  ;;  %vm666_vm2 = vweird.f32 %v645_v59 }
 0x472   :  { %v648_v63 = vsub.f32 1.0, %v647_v61 }
 0x473   :  { %v673_v32 = vor.u32 1.1754944e-38, %v672_v18  ;;  %vm671_vm4 = vcmp.eq.f32.partialorder %v670_v28, 8.507059e+37 }
 0x474   :  { %1202 = vmatmul.msk.bf16.vlgmr.msra.gmra.mxu1 %vm281_vm1, %v1467_v29  ;;  %v649_v2 = vmul.f32 %v1283_v58, %v648_v63 }
 0x475   :  { %867 = vmatpush.bf16.msrb.mxu1 %v1393_v11 }
 0x476   :  { %v650_v5 = vadd.f32 %v1283_v58, %v649_v2 }
 0x477   :  { %v1285_v6 = vpop.eup %1284 }
 0x478   :  { %v654_v9 = vsel %vm653_vm14, %v1283_v58, %v650_v5  ;;  %v662_v10 = vmul.f32 %v1285_v6, %v645_v59  ;;  %vm667_vm0 = vweird.f32 %v1285_v6 }
 0x479   :  { %868 = vmatpush.bf16.msrb.mxu1 %v1399_v12  ;;  %v659_v16 = vsel %vm656_vm15, %v658_v8, %v654_v9  ;;  %vm668_vm3 = vmor %vm666_vm2, %vm667_vm0 }
 0x47a   :  { %678 = vperm.xlu1 %1236, %v659_v16   ;;  %v663_v17 = vsub.f32 1.0, %v662_v10 }
 0x47c   :  { %v664_v19 = vmul.f32 %v1285_v6, %v663_v17 }
 0x47d   :  { %869 = vmatpush.bf16.msrb.mxu1 %v1406_v13 }
 0x47e   :  { %v665_v30 = vadd.f32 %v1285_v6, %v664_v19 }
 0x480   :  { %v669_v33 = vsel %vm668_vm3, %v1285_v6, %v665_v30 }
 0x481   :  { %870 = vmatpush.bf16.msrb.mxu1 %v1413_v14  ;;  %v674_v36 = vsel %vm671_vm4, %v673_v32, %v669_v33 }
 0x482   :  { %683 = vperm.xlu2 %1237, %v674_v36  }
 0x485   :  { %871 = vmatpush.bf16.msrb.mxu1 %v1420_v15 }
 0x489   :  { %872 = vmatpush.bf16.msrb.mxu1 %v1428_v21 }
 0x48d   :  { %873 = vmatpush.bf16.msrb.mxu1 %v1434_v22 }
 0x491   :  { %874 = vmatpush.bf16.msrb.mxu1 %v1442_v23 }
 0x4f1   :  { %v1567_v37 = vpop.f32.mrf.mxu1 }
 0x4f4   :  { %v714_v38 = vpop.f32.mrf.mxu3 }
 0x4f5   :  { %v1200_v39 = vmul.f32 -1.442695, %v714_v38 }
 0x4f7   :  { %1286 = vpow2.f32 %v1200_v39 }
 0x4f9   :  { %v1569_v40 = vpop.f32.mrf.mxu1 }
 0x4fa   :  { %v785_v41 = vpack.c.bf16 %v1569_v40, %v1567_v37 }
 0x4fc   :  { %v716_v42 = vpop.f32.mrf.mxu3  ;;  %794 = vmatmul.bf16.vlgmr.msrb.gmra.mxu2 %v785_v41  ;;  %859 = vmatpush.bf16.msra.mxu0 %v785_v41 }
 0x4fd   :  { %v1287_v43 = vpop.eup %1286  ;;  %v1201_v44 = vmul.f32 -1.442695, %v716_v42 }
 0x4fe   :  { %v725_v45 = vadd.f32 1.0, %v1287_v43 }
 0x4ff   :  { %1288 = vpow2.f32 %v1201_v44  ;;  %1205 = vmatmul.msk.bf16.vlgmr.msra.gmra.mxu0 %vm281_vm1, %v1467_v29 }
 0x500   :  { %948 = vmatpush.bf16.msrb.mxu0 %v1393_v11  ;;  %1290 = vrcp.f32 %v725_v45  ;;  %v738_v53 = vand.u32 2147483648, %v725_v45  ;;  %v736_v56 = vand.u32 2147483647, %v725_v45  ;;  %vm732_vm6 = vweird.f32 %v725_v45 }
 0x502   :  { %v739_v60 = vor.u32 1.1754944e-38, %v738_v53  ;;  %vm737_vm8 = vcmp.eq.f32.partialorder %v736_v56, 8.507059e+37 }
 0x504   :  { %949 = vmatpush.bf16.msrb.mxu0 %v1399_v12 }
 0x505   :  { %v1289_v47 = vpop.eup %1288 }
 0x506   :  { %v1291_v48 = vpop.eup %1290  ;;  %v726_v49 = vadd.f32 1.0, %v1289_v47 }
 0x507   :  { %v728_v50 = vmul.f32 %v1291_v48, %v725_v45  ;;  %vm733_vm5 = vweird.f32 %v1291_v48 }
 0x508   :  { %950 = vmatpush.bf16.msrb.mxu0 %v1406_v13  ;;  %1292 = vrcp.f32 %v726_v49  ;;  %vm734_vm7 = vmor %vm732_vm6, %vm733_vm5  ;;  %v753_v3 = vand.u32 2147483648, %v726_v49  ;;  %v751_v6 = vand.u32 2147483647, %v726_v49  ;;  %vm747_vm10 = vweird.f32 %v726_v49 }
 0x509   :  { %v729_v52 = vsub.f32 1.0, %v728_v50 }
 0x50a   :  { %v754_v9 = vor.u32 1.1754944e-38, %v753_v3  ;;  %vm752_vm12 = vcmp.eq.f32.partialorder %v751_v6, 8.507059e+37 }
 0x50b   :  { %v730_v55 = vmul.f32 %v1291_v48, %v729_v52 }
 0x50c   :  { %951 = vmatpush.bf16.msrb.mxu0 %v1413_v14 }
 0x50d   :  { %v731_v58 = vadd.f32 %v1291_v48, %v730_v55 }
 0x50e   :  { %v1293_v59 = vpop.eup %1292 }
 0x50f   :  { %v735_v61 = vsel %vm734_vm7, %v1291_v48, %v731_v58  ;;  %v743_v63 = vmul.f32 %v1293_v59, %v726_v49  ;;  %vm748_vm9 = vweird.f32 %v1293_v59 }
 0x510   :  { %952 = vmatpush.bf16.msrb.mxu0 %v1420_v15  ;;  %v740_v0 = vsel %vm737_vm8, %v739_v60, %v735_v61  ;;  %vm749_vm11 = vmor %vm747_vm10, %vm748_vm9 }
 0x511   :  { %759 = vperm.xlu0 %1235, %v740_v0   ;;  %v744_v2 = vsub.f32 1.0, %v743_v63 }
 0x513   :  { %v745_v5 = vmul.f32 %v1293_v59, %v744_v2 }
 0x514   :  { %953 = vmatpush.bf16.msrb.mxu0 %v1428_v21 }
 0x515   :  { %v746_v8 = vadd.f32 %v1293_v59, %v745_v5 }
 0x517   :  { %v750_v10 = vsel %vm749_vm11, %v1293_v59, %v746_v8 }
 0x518   :  { %954 = vmatpush.bf16.msrb.mxu0 %v1434_v22  ;;  %v755_v16 = vsel %vm752_vm12, %v754_v9, %v750_v10 }
 0x519   :  { %764 = vperm.xlu1 %1236, %v755_v16  }
 0x51c   :  { %955 = vmatpush.bf16.msrb.mxu0 %v1442_v23 }
 0x57c   :  { %v1583_v17 = vpop.f32.mrf.mxu0 }
 0x57f   :  { %v795_v18 = vpop.f32.mrf.mxu2 }
 0x580   :  { %v1203_v19 = vmul.f32 -1.442695, %v795_v18 }
 0x582   :  { %1294 = vpow2.f32 %v1203_v19 }
 0x584   :  { %v1585_v28 = vpop.f32.mrf.mxu0 }
 0x585   :  { %v866_v30 = vpack.c.bf16 %v1585_v28, %v1583_v17 }
 0x587   :  { %v797_v32 = vpop.f32.mrf.mxu2  ;;  %875 = vmatmul.bf16.vlgmr.msrb.gmra.mxu1 %v866_v30  ;;  %940 = vmatpush.bf16.msra.mxu3 %v866_v30 }
 0x588   :  { %v1295_v33 = vpop.eup %1294  ;;  %v1204_v36 = vmul.f32 -1.442695, %v797_v32 }
 0x589   :  { %v806_v38 = vadd.f32 1.0, %v1295_v33 }
 0x58a   :  { %1296 = vpow2.f32 %v1204_v36  ;;  %1208 = vmatmul.msk.bf16.vlgmr.msra.gmra.mxu3 %vm281_vm1, %v1467_v29 }
 0x58b   :  { %1029 = vmatpush.bf16.msrb.mxu3 %v1393_v11  ;;  %1298 = vrcp.f32 %v806_v38  ;;  %v819_v45 = vand.u32 2147483648, %v806_v38  ;;  %v817_v47 = vand.u32 2147483647, %v806_v38  ;;  %vm813_vm14 = vweird.f32 %v806_v38 }
 0x58d   :  { %vm818_vm0 = vcmp.eq.f32.partialorder %v817_v47, 8.507059e+37 }
 0x58f   :  { %1030 = vmatpush.bf16.msrb.mxu3 %v1399_v12  ;;  %v820_v12 = vor.u32 1.1754944e-38, %v819_v45 }
 0x590   :  { %v1297_v39 = vpop.eup %1296 }
 0x591   :  { %v1299_v41 = vpop.eup %1298  ;;  %v807_v42 = vadd.f32 1.0, %v1297_v39 }
 0x592   :  { %v809_v43 = vmul.f32 %v1299_v41, %v806_v38  ;;  %vm814_vm13 = vweird.f32 %v1299_v41 }
 0x593   :  { %1031 = vmatpush.bf16.msrb.mxu3 %v1406_v13  ;;  %1300 = vrcp.f32 %v807_v42  ;;  %vm815_vm15 = vmor %vm813_vm14, %vm814_vm13  ;;  %v832_v56 = vand.u32 2147483647, %v807_v42  ;;  %vm828_vm3 = vweird.f32 %v807_v42 }
 0x594   :  { %v810_v44 = vsub.f32 1.0, %v809_v43 }
 0x595   :  { %vm833_vm5 = vcmp.eq.f32.partialorder %v832_v56, 8.507059e+37 }
 0x596   :  { %v811_v11 = vmul.f32 %v1299_v41, %v810_v44 }
 0x597   :  { %1032 = vmatpush.bf16.msrb.mxu3 %v1413_v14  ;;  %v834_v14 = vand.u32 2147483648, %v807_v42 }
 0x598   :  { %v812_v48 = vadd.f32 %v1299_v41, %v811_v11 }
 0x599   :  { %v1301_v49 = vpop.eup %1300 }
 0x59a   :  { %v816_v50 = vsel %vm815_vm15, %v1299_v41, %v812_v48  ;;  %v824_v13 = vmul.f32 %v1301_v49, %v807_v42  ;;  %vm829_vm2 = vweird.f32 %v1301_v49 }
 0x59b   :  { %1033 = vmatpush.bf16.msrb.mxu3 %v1420_v15  ;;  %v821_v52 = vsel %vm818_vm0, %v820_v12, %v816_v50  ;;  %vm830_vm4 = vmor %vm828_vm3, %vm829_vm2  ;;  %v835_v15 = vor.u32 1.1754944e-38, %v834_v14 }
 0x59c   :  { %840 = vperm.xlu2 %1237, %v821_v52   ;;  %v825_v53 = vsub.f32 1.0, %v824_v13 }
 0x59e   :  { %v826_v55 = vmul.f32 %v1301_v49, %v825_v53 }
 0x59f   :  { %1034 = vmatpush.bf16.msrb.mxu3 %v1428_v21 }
 0x5a0   :  { %v827_v58 = vadd.f32 %v1301_v49, %v826_v55 }
 0x5a2   :  { %v831_v59 = vsel %vm830_vm4, %v1301_v49, %v827_v58 }
 0x5a3   :  { %1035 = vmatpush.bf16.msrb.mxu3 %v1434_v22  ;;  %v836_v60 = vsel %vm833_vm5, %v835_v15, %v831_v59 }
 0x5a4   :  { %845 = vperm.xlu0 %1235, %v836_v60  }
 0x5a7   :  { %1036 = vmatpush.bf16.msrb.mxu3 %v1442_v23 }
 0x604   :  { %v876_v61 = vpop.f32.mrf.mxu1 }
 0x605   :  { %v1206_v63 = vmul.f32 -1.442695, %v876_v61 }
 0x607   :  { %1302 = vpow2.f32 %v1206_v63 }
 0x60c   :  { %v878_v21 = vpop.f32.mrf.mxu1 }
 0x60d   :  { %v1303_v0 = vpop.eup %1302  ;;  %v1207_v2 = vmul.f32 -1.442695, %v878_v21  ;;  %v1599_v3 = vpop.f32.mrf.mxu3 }
 0x60e   :  { %v887_v5 = vadd.f32 1.0, %v1303_v0 }
 0x60f   :  { %1304 = vpow2.f32 %v1207_v2 }
 0x610   :  { %1306 = vrcp.f32 %v887_v5  ;;  %v900_v18 = vand.u32 2147483648, %v887_v5  ;;  %v898_v30 = vand.u32 2147483647, %v887_v5  ;;  %vm894_vm7 = vweird.f32 %v887_v5 }
 0x612   :  { %v901_v36 = vor.u32 1.1754944e-38, %v900_v18  ;;  %vm899_vm9 = vcmp.eq.f32.partialorder %v898_v30, 8.507059e+37 }
 0x615   :  { %v1305_v22 = vpop.eup %1304  ;;  %v1601_v6 = vpop.f32.mrf.mxu3 }
 0x616   :  { %v1307_v8 = vpop.eup %1306  ;;  %v888_v9 = vadd.f32 1.0, %v1305_v22  ;;  %v947_v10 = vpack.c.bf16 %v1601_v6, %v1599_v3 }
 0x617   :  { %v890_v23 = vmul.f32 %v1307_v8, %v887_v5  ;;  %vm895_vm6 = vweird.f32 %v1307_v8 }
 0x618   :  { %1308 = vrcp.f32 %v888_v9  ;;  %956 = vmatmul.bf16.vlgmr.msrb.gmra.mxu0 %v947_v10  ;;  %1021 = vmatpush.bf16.msra.mxu2 %v947_v10  ;;  %vm896_vm8 = vmor %vm894_vm7, %vm895_vm6  ;;  %v915_v43 = vand.u32 2147483648, %v888_v9  ;;  %v913_v45 = vand.u32 2147483647, %v888_v9 }
 0x619   :  { %v891_v16 = vsub.f32 1.0, %v890_v23 }
 0x61a   :  { %vm914_vm12 = vcmp.eq.f32.partialorder %v913_v45, 8.507059e+37 }
 0x61b   :  { %1211 = vmatmul.msk.bf16.vlgmr.msra.gmra.mxu2 %vm281_vm1, %v1467_v29  ;;  %v892_v19 = vmul.f32 %v1307_v8, %v891_v16  ;;  %vm909_vm1 = vweird.f32 %v888_v9  ;;  %v916_v29 = vor.u32 1.1754944e-38, %v915_v43 }
 0x61d   :  { %v893_v32 = vadd.f32 %v1307_v8, %v892_v19 }
 0x61e   :  { %v1309_v33 = vpop.eup %1308 }
 0x61f   :  { %v897_v38 = vsel %vm896_vm8, %v1307_v8, %v893_v32  ;;  %v905_v39 = vmul.f32 %v1309_v33, %v888_v9  ;;  %vm910_vm10 = vweird.f32 %v1309_v33 }
 0x620   :  { %v902_v41 = vsel %vm899_vm9, %v901_v36, %v897_v38  ;;  %vm911_vm11 = vmor %vm909_vm1, %vm910_vm10 }
 0x621   :  { %921 = vperm.xlu1 %1236, %v902_v41   ;;  %v906_v42 = vsub.f32 1.0, %v905_v39 }
 0x623   :  { %v907_v44 = vmul.f32 %v1309_v33, %v906_v42 }
 0x625   :  { %v908_v11 = vadd.f32 %v1309_v33, %v907_v44 }
 0x627   :  { %v912_v47 = vsel %vm911_vm11, %v1309_v33, %v908_v11 }
 0x628   :  { %v917_v48 = vsel %vm914_vm12, %v916_v29, %v912_v47 }
 0x629   :  { %926 = vperm.xlu2 %1237, %v917_v48  }
 0x695   :  { %v957_v49 = vpop.f32.mrf.mxu0 }
 0x696   :  { %v1209_v12 = vmul.f32 -1.442695, %v957_v49 }
 0x698   :  { %1310 = vpow2.f32 %v1209_v12 }
 0x69d   :  { %v959_v50 = vpop.f32.mrf.mxu0 }
 0x69e   :  { %v1311_v13 = vpop.eup %1310  ;;  %v1210_v52 = vmul.f32 -1.442695, %v959_v50  ;;  %v1607_v53 = vpop.f32.mrf.mxu2 }
 0x69f   :  { %v968_v14 = vadd.f32 1.0, %v1311_v13 }
 0x6a0   :  { %1312 = vpow2.f32 %v1210_v52 }
 0x6a1   :  { %1314 = vrcp.f32 %v968_v14  ;;  %v981_v63 = vand.u32 2147483648, %v968_v14  ;;  %v979_v0 = vand.u32 2147483647, %v968_v14  ;;  %vm975_vm14 = vweird.f32 %v968_v14 }
 0x6a3   :  { %v982_v22 = vor.u32 1.1754944e-38, %v981_v63  ;;  %vm980_vm0 = vcmp.eq.f32.partialorder %v979_v0, 8.507059e+37 }
 0x6a6   :  { %v1313_v55 = vpop.eup %1312  ;;  %v1609_v56 = vpop.f32.mrf.mxu2 }
 0x6a7   :  { %v1315_v58 = vpop.eup %1314  ;;  %v969_v15 = vadd.f32 1.0, %v1313_v55  ;;  %v1028_v59 = vpack.c.bf16 %v1609_v56, %v1607_v53 }
 0x6a8   :  { %v971_v60 = vmul.f32 %v1315_v58, %v968_v14  ;;  %vm976_vm13 = vweird.f32 %v1315_v58 }
 0x6a9   :  { %1316 = vrcp.f32 %v969_v15  ;;  %1037 = vmatmul.bf16.vlgmr.msrb.gmra.mxu3 %v1028_v59  ;;  %vm977_vm15 = vmor %vm975_vm14, %vm976_vm13  ;;  %v996_v16 = vand.u32 2147483648, %v969_v15  ;;  %v994_v19 = vand.u32 2147483647, %v969_v15  ;;  %vm990_vm3 = vweird.f32 %v969_v15 }
 0x6aa   :  { %v972_v61 = vsub.f32 1.0, %v971_v60 }
 0x6ab   :  { %v997_v32 = vor.u32 1.1754944e-38, %v996_v16  ;;  %vm995_vm5 = vcmp.eq.f32.partialorder %v994_v19, 8.507059e+37 }
 0x6ac   :  { %v973_v21 = vmul.f32 %v1315_v58, %v972_v61 }
 0x6ae   :  { %v974_v2 = vadd.f32 %v1315_v58, %v973_v21 }
 0x6af   :  { %v1317_v5 = vpop.eup %1316 }
 0x6b0   :  { %v978_v8 = vsel %vm977_vm15, %v1315_v58, %v974_v2  ;;  %v986_v9 = vmul.f32 %v1317_v5, %v969_v15  ;;  %vm991_vm2 = vweird.f32 %v1317_v5 }
 0x6b1   :  { %v983_v10 = vsel %vm980_vm0, %v982_v22, %v978_v8  ;;  %vm992_vm4 = vmor %vm990_vm3, %vm991_vm2  ;;  %v267_v22 = vpop.permute.xlu0 %266  ;;  %v355_v8 = vpop.permute.xlu1 %354 }
 0x6b2   :  { %1002 = vperm.xlu0 %1235, %v983_v10   ;;  %v987_v23 = vsub.f32 1.0, %v986_v9  ;;  %v436_v9 = vpop.permute.xlu2 %435 }
 0x6b4   :  { %v988_v18 = vmul.f32 %v1317_v5, %v987_v23 }
 0x6b6   :  { %v989_v30 = vadd.f32 %v1317_v5, %v988_v18 }
 0x6b8   :  { %v993_v33 = vsel %vm992_vm4, %v1317_v5, %v989_v30 }
 0x6b9   :  { %v998_v36 = vsel %vm995_vm5, %v997_v32, %v993_v33  ;;  %v272_v10 = vpop.permute.xlu0 %271  ;;  %v360_v23 = vpop.permute.xlu1 %359 }
 0x6ba   :  { %1007 = vperm.xlu1 %1236, %v998_v36   ;;  %v441_v16 = vpop.permute.xlu2 %440 }
 0x6c1   :  { %v517_v18 = vpop.permute.xlu0 %516  ;;  %v522_v19 = vpop.permute.xlu1 %521 }
 0x6c2   :  { %v598_v30 = vpop.permute.xlu2 %597 }
 0x6c9   :  { %v603_v32 = vpop.permute.xlu0 %602  ;;  %v679_v36 = vpop.permute.xlu1 %678 }
 0x6ca   :  { %v684_v33 = vpop.permute.xlu2 %683 }
 0x72c   :  { %v1038_v38 = vpop.f32.mrf.mxu3 }
 0x72d   :  { %v1212_v39 = vmul.f32 -1.442695, %v1038_v38  ;;  %v760_v38 = vpop.permute.xlu0 %759 }
 0x72f   :  { %1318 = vpow2.f32 %v1212_v39  ;;  %v362_v39 = vmul.f32 %v355_v8, %v1471_v31  ;;  %v767_v31 = vmul.f32 %v760_v38, %v1551_v54  ;;  %v363_v54 = vmul.f32 %v360_v23, %v1473_v34 }
 0x734   :  { %v1040_v41 = vpop.f32.mrf.mxu3 }
 0x735   :  { %v1319_v42 = vpop.eup %1318  ;;  %v1213_v43 = vmul.f32 -1.442695, %v1040_v41  ;;  %v274_v41 = vmul.f32 %v267_v22, %v143_v26 }
 0x736   :  { %v1049_v44 = vadd.f32 1.0, %v1319_v42  ;;  %v443_v42 = vmul.f32 %v436_v9, %v1495_v62 }
 0x737   :  { %1320 = vpow2.f32 %v1213_v43  ;;  %v765_v43 = vpop.permute.xlu1 %764 }
 0x738   :  { %1322 = vrcp.f32 %v1049_v44  ;;  %v1062_v49 = vand.u32 2147483648, %v1049_v44  ;;  %v1060_v50 = vand.u32 2147483647, %v1049_v44  ;;  %vm1056_vm7 = vweird.f32 %v1049_v44 }
 0x73a   :  { %v1063_v14 = vor.u32 1.1754944e-38, %v1062_v49  ;;  %vm1061_vm9 = vcmp.eq.f32.partialorder %v1060_v50, 8.507059e+37 }
 0x73d   :  { %v1321_v45 = vpop.eup %1320 }
 0x73e   :  { %v1323_v11 = vpop.eup %1322  ;;  %v1050_v29 = vadd.f32 1.0, %v1321_v45  ;;  %v364_v45 = vadd.f32 %v362_v39, %v274_v41 }
 0x73f   :  { %v1052_v47 = vmul.f32 %v1323_v11, %v1049_v44  ;;  %vm1057_vm6 = vweird.f32 %v1323_v11  ;;  %v841_v44 = vpop.permute.xlu2 %840  ;;  %v922_v24 = vpop.permute.xlu1 %921 }
 0x740   :  { %1324 = vrcp.f32 %v1050_v29  ;;  %vm1058_vm8 = vmor %vm1056_vm7, %vm1057_vm6  ;;  %v1077_v60 = vand.u32 2147483648, %v1050_v29  ;;  %v1075_v63 = vand.u32 2147483647, %v1050_v29  ;;  %vm1071_vm1 = vweird.f32 %v1050_v29 }
 0x741   :  { %v1053_v48 = vsub.f32 1.0, %v1052_v47  ;;  %v445_v47 = vadd.f32 %v443_v42, %v364_v45  ;;  %v848_v62 = vmul.f32 %v841_v44, %v1567_v37  ;;  %v275_v37 = vmul.f32 %v272_v10, %v144_v27 }
 0x742   :  { %v1078_v0 = vor.u32 1.1754944e-38, %v1077_v60  ;;  %vm1076_vm12 = vcmp.eq.f32.partialorder %v1075_v63, 8.507059e+37 }
 0x743   :  { %v1054_v12 = vmul.f32 %v1323_v11, %v1053_v48  ;;  %v605_v48 = vmul.f32 %v598_v30, %v1519_v20 }
 0x745   :  { %v1055_v13 = vadd.f32 %v1323_v11, %v1054_v12  ;;  %v686_v12 = vmul.f32 %v679_v36, %v1535_v4 }
 0x746   :  { %v1325_v52 = vpop.eup %1324 }
 0x747   :  { %v1059_v55 = vsel %vm1058_vm8, %v1323_v11, %v1055_v13  ;;  %v1067_v58 = vmul.f32 %v1325_v52, %v1050_v29  ;;  %vm1072_vm10 = vweird.f32 %v1325_v52  ;;  %v524_v11 = vmul.f32 %v517_v18, %v1511_v46  ;;  %v846_v29 = vpop.permute.xlu0 %845  ;;  %v927_v13 = vpop.permute.xlu2 %926 }
 0x748   :  { %v1064_v15 = vsel %vm1061_vm9, %v1063_v14, %v1059_v55  ;;  %vm1073_vm11 = vmor %vm1071_vm1, %vm1072_vm10  ;;  %v929_v55 = vmul.f32 %v922_v24, %v1583_v17  ;;  %v444_v17 = vmul.f32 %v441_v16, %v1497_v1  ;;  %v849_v34 = vmul.f32 %v846_v29, %v1569_v40  ;;  %v1008_v8 = vpop.permute.xlu1 %1007 }
 0x749   :  { %1083 = vperm.xlu2 %1237, %v1064_v15   ;;  %v1068_v59 = vsub.f32 1.0, %v1067_v58  ;;  %v526_v49 = vadd.f32 %v524_v11, %v445_v47  ;;  %v930_v27 = vmul.f32 %v927_v13, %v1585_v28  ;;  %v1011_v9 = vmul.f32 %v1008_v8, %v1601_v6 }
 0x74b   :  { %v1069_v61 = vmul.f32 %v1325_v52, %v1068_v59  ;;  %v607_v50 = vadd.f32 %v605_v48, %v526_v49 }
 0x74d   :  { %v1070_v21 = vadd.f32 %v1325_v52, %v1069_v61  ;;  %v688_v26 = vadd.f32 %v686_v12, %v607_v50  ;;  %v365_v61 = vadd.f32 %v363_v54, %v275_v37 }
 0x74f   :  { %v1074_v2 = vsel %vm1073_vm11, %v1325_v52, %v1070_v21  ;;  %v1003_v52 = vpop.permute.xlu0 %1002  ;;  %v769_v14 = vadd.f32 %v767_v31, %v688_v26  ;;  %v446_v63 = vadd.f32 %v444_v17, %v365_v61  ;;  %v606_v21 = vmul.f32 %v603_v32, %v1521_v35 }
 0x750   :  { %v1079_v5 = vsel %vm1076_vm12, %v1078_v0, %v1074_v2  ;;  %v1010_v58 = vmul.f32 %v1003_v52, %v1599_v3  ;;  %v525_v3 = vmul.f32 %v522_v19, %v1513_v51 }
 0x751   :  { %1088 = vperm.xlu0 %1235, %v1079_v5   ;;  %v850_v46 = vadd.f32 %v848_v62, %v769_v14  ;;  %v768_v5 = vmul.f32 %v765_v43, %v1553_v57 }
 0x752   :  { %v527_v0 = vadd.f32 %v525_v3, %v446_v63 }
 0x753   :  { %v931_v15 = vadd.f32 %v929_v55, %v850_v46 }
 0x754   :  { %v608_v2 = vadd.f32 %v606_v21, %v527_v0 }
 0x755   :  { %v1012_v59 = vadd.f32 %v1010_v58, %v931_v15 }
 0x7a3   :  { %v1084_v20 = vpop.permute.xlu2 %1083 }
 0x7a4   :  { %v1091_v4 = vmul.f32 %v1084_v20, %v1607_v53  ;;  %v687_v53 = vmul.f32 %v684_v33, %v1537_v7 }
 0x7a6   :  { %v1093_v60 = vadd.f32 %v1091_v4, %v1012_v59  ;;  %v689_v22 = vadd.f32 %v687_v53, %v608_v2 }
 0x7a8   :  { %1095 = vst [vmem:[%s1648_s5] sm:$0xff] %v1093_v60  ;;  %v770_v25 = vadd.f32 %v768_v5, %v689_v22 }
 0x7aa   :  { %v851_v1 = vadd.f32 %v849_v34, %v770_v25 }
 0x7ac   :  { %v932_v51 = vadd.f32 %v930_v27, %v851_v1 }
 0x7ae   :  { %v1013_v23 = vadd.f32 %v1011_v9, %v932_v51 }
 0x7c3   :  { %v1089_v10 = vpop.permute.xlu0 %1088 }
 0x7c4   :  { %v1092_v35 = vmul.f32 %v1089_v10, %v1609_v56 }
 0x7c6   :  { %v1094_v16 = vadd.f32 %v1092_v35, %v1013_v23 }
 0x7c8   :  { %1096 = vst [vmem:[%s1648_s5 + $0x8] sm:$0xff] %v1094_v16 }

</bundles_post_ra>
